<compile_context>
chip_gen: v7x
topology: tpu7x:2x2x1
jax: 0.10.0
libtpu: 0.0.40
codegen_flags: <defaults>
</compile_context>

<pallas_src>
import functools
import math

import jax
import jax.numpy as jnp
from jax.experimental import pallas as pl
from jax.experimental.pallas import tpu as pltpu


# ----------------------------- helpers -----------------------------

def _tile(dim, target, align):
    """Largest `align`-multiple divisor of dim that is <= target, else full dim."""
    if dim <= target:
        return dim
    t = (target // align) * align
    while t >= align:
        if dim % t == 0:
            return t
        t -= align
    return dim


def _bytes(shape, dtype):
    return math.prod(shape) * jnp.dtype(dtype).itemsize


def _compiler_params(semantics, working_set_bytes=0):
    """Dimension semantics + an explicit scoped-VMEM limit sized from the real tiles.

    Only raised above the conservative default when the working set needs it, and never
    above 64 MiB so the same kernels compile on v5e/v6e/v7x.
    """
    kw = {}
    if working_set_bytes > (16 << 20):
        kw["vmem_limit_bytes"] = int(min(2 * working_set_bytes, 64 << 20))
    return pltpu.CompilerParams(dimension_semantics=semantics, **kw)


# ----------------------------- kernel 1: embed + PE + LayerNorm0 -----------------------------

def _embed_ln_kernel(x_ref, pe_ref, g_ref, b_ref, o_ref):
    x = x_ref[0].astype(jnp.float32) + pe_ref[0]                  # (tq, D)
    mean = jnp.mean(x, axis=-1, keepdims=True)
    var = jnp.mean((x - mean) ** 2, axis=-1, keepdims=True)
    xn = (x - mean) * jax.lax.rsqrt(var + 1e-5)
    o_ref[...] = ((xn * g_ref[...] + b_ref[...])[None]).astype(o_ref.dtype)


def embed_pe_layernorm(emb, pe, gamma, beta):
    B, S, D = emb.shape
    tq = _tile(S, 256, 8)
    ws = 2 * (2 * _bytes((1, tq, D), jnp.float32) + _bytes((1, tq, D), jnp.bfloat16)
              + 2 * _bytes((1, D), jnp.float32))
    return pl.pallas_call(
        _embed_ln_kernel,
        out_shape=jax.ShapeDtypeStruct((B, S, D), jnp.bfloat16),   # bf16 residual stream
        grid=(B, S // tq),
        in_specs=[pl.BlockSpec((1, tq, D), lambda b, s: (b, s, 0)),
                  pl.BlockSpec((1, tq, D), lambda b, s: (0, s, 0)),
                  pl.BlockSpec((1, D), lambda b, s: (0, 0)),
                  pl.BlockSpec((1, D), lambda b, s: (0, 0))],
        out_specs=pl.BlockSpec((1, tq, D), lambda b, s: (b, s, 0)),
        compiler_params=_compiler_params(("parallel", "parallel"), ws),
    )(emb, pe, gamma, beta)


# ----------------------------- kernel 2: LN1 + per-head QKV projection -----------------------------

def _qkv_proj_kernel(x_ref, g_ref, b_ref, w_ref, bias_ref, q_ref, k_ref, v_ref,
                     xn_sc, *, head_dim, scale):
    # LayerNorm computed once per row tile (head axis is innermost/"arbitrary").
    @pl.when(pl.program_id(2) == 0)
    def _():
        x = x_ref[0].astype(jnp.float32)                           # (tq, D)
        mean = jnp.mean(x, axis=-1, keepdims=True)
        var = jnp.mean((x - mean) ** 2, axis=-1, keepdims=True)
        xn = (x - mean) * jax.lax.rsqrt(var + 1e-5) * g_ref[...] + b_ref[...]
        xn_sc[...] = xn.astype(jnp.bfloat16)

    qkv = jnp.dot(xn_sc[...], w_ref[0],
                  preferred_element_type=jnp.float32) + bias_ref[0]   # (tq, 3*hd)
    # Per-head slices start at 0 / hd / 2*hd lanes (128-aligned for real head dims).
    q_ref[...] = ((qkv[:, :head_dim] * scale)[None, None]).astype(q_ref.dtype)  # scale folded into q
    k_ref[...] = (qkv[:, head_dim:2 * head_dim][None, None]).astype(k_ref.dtype)
    v_ref[...] = (qkv[:, 2 * head_dim:][None, None]).astype(v_ref.dtype)


def qkv_projection(x, ln_g, ln_b, wqkv_h, bqkv_h):
    B, S, D = x.shape
    H, _, three_hd = wqkv_h.shape
    hd = three_hd // 3
    tq = _tile(S, 256, 16)
    ws = (2 * (_bytes((1, tq, D), x.dtype) + _bytes((1, D, three_hd), wqkv_h.dtype)
               + _bytes((1, 1, three_hd), jnp.float32)
               + 3 * _bytes((1, 1, tq, hd), jnp.bfloat16))
          + _bytes((tq, D), jnp.bfloat16))
    qkv_shape = jax.ShapeDtypeStruct((B, H, S, hd), jnp.bfloat16)
    out_spec = pl.BlockSpec((1, 1, tq, hd), lambda b, s, h: (b, h, s, 0))
    return pl.pallas_call(
        functools.partial(_qkv_proj_kernel, head_dim=hd, scale=1.0 / math.sqrt(hd)),
        out_shape=(qkv_shape, qkv_shape, qkv_shape),
        grid=(B, S // tq, H),
        in_specs=[pl.BlockSpec((1, tq, D), lambda b, s, h: (b, s, 0)),
                  pl.BlockSpec((1, D), lambda b, s, h: (0, 0)),
                  pl.BlockSpec((1, D), lambda b, s, h: (0, 0)),
                  pl.BlockSpec((1, D, three_hd), lambda b, s, h: (h, 0, 0)),
                  pl.BlockSpec((1, 1, three_hd), lambda b, s, h: (h, 0, 0))],
        out_specs=(out_spec, out_spec, out_spec),
        scratch_shapes=[pltpu.VMEM((tq, D), jnp.bfloat16)],
        compiler_params=_compiler_params(("parallel", "parallel", "arbitrary"), ws),
    )(x, ln_g, ln_b, wqkv_h, bqkv_h)


# ----------------------------- kernel 3: flash attention + out-proj + residual -----------------------------

def _flash_attn_kernel(q_ref, k_ref, v_ref, bias_ref, wo_ref, bo_ref, x_ref, o_ref,
                       m_sc, l_sc, acc_sc, oacc_sc):
    h = pl.program_id(2)
    kv = pl.program_id(3)
    last_h = pl.num_programs(2) - 1
    last_kv = pl.num_programs(3) - 1

    @pl.when((h == 0) & (kv == 0))
    def _():
        oacc_sc[...] = jnp.zeros_like(oacc_sc)                     # lane-dense (tq, D) f32

    @pl.when(kv == 0)
    def _():
        m_sc[...] = jnp.full_like(m_sc, -jnp.inf)
        l_sc[...] = jnp.zeros_like(l_sc)
        acc_sc[...] = jnp.zeros_like(acc_sc)

    q = q_ref[0, 0]                                                # (tq, hd) bf16, pre-scaled
    k = k_ref[0, 0]                                                # (tkv, hd) bf16
    v = v_ref[0, 0]                                                # (tkv, hd) bf16
    s = jax.lax.dot_general(q, k, (((1,), (1,)), ((), ())),
                            preferred_element_type=jnp.float32)    # (tq, tkv)
    s = s + bias_ref[0]                                            # additive key-padding bias

    m_prev = m_sc[...]
    m_new = jnp.maximum(m_prev, jnp.max(s, axis=-1, keepdims=True))
    alpha = jnp.exp(m_prev - m_new)
    p = jnp.exp(s - m_new)
    l_sc[...] = alpha * l_sc[...] + jnp.sum(p, axis=-1, keepdims=True)
    acc_sc[...] = alpha * acc_sc[...] + jnp.dot(p.astype(jnp.bfloat16), v,
                                                preferred_element_type=jnp.float32)
    m_sc[...] = m_new

    @pl.when(kv == last_kv)
    def _():
        # Per-head out-projection accumulated straight into the lane-dense (tq, D) scratch.
        ctx = acc_sc[...] * pl.reciprocal(l_sc[...], approx=True)          # (tq, hd)
        oacc_sc[...] += jnp.dot(ctx.astype(jnp.bfloat16), wo_ref[0],
                                preferred_element_type=jnp.float32)        # (tq, D)

    @pl.when((kv == last_kv) & (h == last_h))
    def _():
        res = x_ref[0].astype(jnp.float32) + bo_ref[...] + oacc_sc[...]
        o_ref[...] = res[None].astype(o_ref.dtype)


def flash_attention(q, k, v, mask_bias, wo_h, bo, x):
    B, H, S, hd = q.shape
    D = x.shape[-1]
    tq = _tile(S, 256, 16)
    tkv = _tile(S, 512, 16)
    ws = (2 * (_bytes((1, 1, tq, hd), q.dtype) + 2 * _bytes((1, 1, tkv, hd), q.dtype)
               + _bytes((1, 1, tkv), jnp.float32) + _bytes((1, hd, D), wo_h.dtype)
               + _bytes((1, D), jnp.float32) + 2 * _bytes((1, tq, D), x.dtype))
          + _bytes((tq, D + hd + 2), jnp.float32))
    return pl.pallas_call(
        _flash_attn_kernel,
        out_shape=jax.ShapeDtypeStruct((B, S, D), jnp.bfloat16),
        grid=(B, S // tq, H, S // tkv),
        in_specs=[pl.BlockSpec((1, 1, tq, hd), lambda b, qi, h, kv: (b, h, qi, 0)),
                  pl.BlockSpec((1, 1, tkv, hd), lambda b, qi, h, kv: (b, h, kv, 0)),
                  pl.BlockSpec((1, 1, tkv, hd), lambda b, qi, h, kv: (b, h, kv, 0)),
                  pl.BlockSpec((1, 1, tkv), lambda b, qi, h, kv: (b, 0, kv)),
                  pl.BlockSpec((1, hd, D), lambda b, qi, h, kv: (h, 0, 0)),
                  pl.BlockSpec((1, D), lambda b, qi, h, kv: (0, 0)),
                  pl.BlockSpec((1, tq, D), lambda b, qi, h, kv: (b, qi, 0))],
        out_specs=pl.BlockSpec((1, tq, D), lambda b, qi, h, kv: (b, qi, 0)),
        scratch_shapes=[pltpu.VMEM((tq, 1), jnp.float32),
                        pltpu.VMEM((tq, 1), jnp.float32),
                        pltpu.VMEM((tq, hd), jnp.float32),
                        pltpu.VMEM((tq, D), jnp.float32)],
        compiler_params=_compiler_params(
            ("parallel", "parallel", "arbitrary", "arbitrary"), ws),
    )(q, k, v, mask_bias, wo_h, bo, x)


# ----------------------------- kernel 4: LN2 + FFN (hidden-dim tiled) + residual -----------------------------

def _ffn_kernel(r_ref, g_ref, b_ref, w1_ref, b1_ref, w2_ref, b2_ref, o_ref,
                xn_sc, acc_sc):
    @pl.when(pl.program_id(2) == 0)
    def _():
        r = r_ref[0].astype(jnp.float32)                           # (tq, D)
        mean = jnp.mean(r, axis=-1, keepdims=True)
        var = jnp.mean((r - mean) ** 2, axis=-1, keepdims=True)
        rn = (r - mean) * jax.lax.rsqrt(var + 1e-5) * g_ref[...] + b_ref[...]
        xn_sc[...] = rn.astype(jnp.bfloat16)
        acc_sc[...] = r + b2_ref[...]                              # residual + final bias

    hid = jnp.dot(xn_sc[...], w1_ref[...],
                  preferred_element_type=jnp.float32) + b1_ref[...]
    hid = jnp.maximum(hid, 0.0)
    acc_sc[...] += jnp.dot(hid.astype(jnp.bfloat16), w2_ref[...],
                           preferred_element_type=jnp.float32)

    @pl.when(pl.program_id(2) == pl.num_programs(2) - 1)
    def _():
        o_ref[...] = acc_sc[...][None].astype(o_ref.dtype)


def ffn_block(r, ln_g, ln_b, w1, b1, w2, b2):
    B, S, D = r.shape
    DF = w1.shape[1]
    tq = _tile(S, 256, 16)
    tf = _tile(DF, 512, 128)                                       # tiles w1 (N) and w2 (K)
    ws = (2 * (_bytes((1, tq, D), r.dtype) + _bytes((D, tf), w1.dtype)
               + _bytes((tf, D), w2.dtype) + _bytes((1, tf), jnp.float32)
               + 3 * _bytes((1, D), jnp.float32) + _bytes((1, tq, D), jnp.bfloat16))
          + _bytes((tq, D), jnp.bfloat16) + _bytes((tq, D), jnp.float32))
    return pl.pallas_call(
        _ffn_kernel,
        out_shape=jax.ShapeDtypeStruct((B, S, D), jnp.bfloat16),
        grid=(B, S // tq, DF // tf),
        in_specs=[pl.BlockSpec((1, tq, D), lambda b, s, f: (b, s, 0)),
                  pl.BlockSpec((1, D), lambda b, s, f: (0, 0)),
                  pl.BlockSpec((1, D), lambda b, s, f: (0, 0)),
                  pl.BlockSpec((D, tf), lambda b, s, f: (0, f)),
                  pl.BlockSpec((1, tf), lambda b, s, f: (0, f)),
                  pl.BlockSpec((tf, D), lambda b, s, f: (f, 0)),
                  pl.BlockSpec((1, D), lambda b, s, f: (0, 0))],
        out_specs=pl.BlockSpec((1, tq, D), lambda b, s, f: (b, s, 0)),
        scratch_shapes=[pltpu.VMEM((tq, D), jnp.bfloat16),
                        pltpu.VMEM((tq, D), jnp.float32)],
        compiler_params=_compiler_params(("parallel", "parallel", "arbitrary"), ws),
    )(r, ln_g, ln_b, w1, b1, w2, b2)


# ----------------------------- kernel 5: LM head (tiled matmul + bias) -----------------------------

def _matmul_bias_kernel(x_ref, w_ref, b_ref, o_ref, acc_ref):
    @pl.when(pl.program_id(2) == 0)
    def _():
        acc_ref[...] = jnp.zeros_like(acc_ref)
    acc_ref[...] += jnp.dot(x_ref[...], w_ref[...], preferred_element_type=jnp.float32)
    @pl.when(pl.program_id(2) == pl.num_programs(2) - 1)
    def _():
        o_ref[...] = (acc_ref[...] + b_ref[...]).astype(o_ref.dtype)


def lm_head(x2d, w, b):
    """x2d: (M, K) bf16, w: (K, N) bf16, b: (1, N) f32 -> (M, N) f32."""
    M, K = x2d.shape
    N = w.shape[1]
    tm = _tile(M, 512, 16)      # 16-aligned (bf16 sublane packing), bigger tile -> fewer weight re-reads
    tn = _tile(N, 512, 128)     # safe on v7x's 64 MiB; v6e could go to 1024
    tk = _tile(K, 512, 128)
    ws = (2 * (_bytes((tm, tk), x2d.dtype) + _bytes((tk, tn), w.dtype)
               + _bytes((1, tn), jnp.float32) + _bytes((tm, tn), jnp.float32))
          + _bytes((tm, tn), jnp.float32))
    return pl.pallas_call(
        _matmul_bias_kernel,
        out_shape=jax.ShapeDtypeStruct((M, N), jnp.float32),
        grid=(M // tm, N // tn, K // tk),
        in_specs=[pl.BlockSpec((tm, tk), lambda i, j, k: (i, k)),
                  pl.BlockSpec((tk, tn), lambda i, j, k: (k, j)),
                  pl.BlockSpec((1, tn), lambda i, j, k: (0, j))],
        out_specs=pl.BlockSpec((tm, tn), lambda i, j, k: (i, j)),
        scratch_shapes=[pltpu.VMEM((tm, tn), jnp.float32)],
        compiler_params=_compiler_params(("parallel", "parallel", "arbitrary"), ws),
    )(x2d, w, b)


# ----------------------------- model glue -----------------------------

def sinusoidal_positional_encoding(max_len, d):
    pos = jnp.arange(max_len, dtype=jnp.float32)[:, None]
    i = jnp.arange(0, d, 2, dtype=jnp.float32)
    div = jnp.exp(-jnp.log(10000.0) * i / d)
    pe = jnp.zeros((max_len, d), jnp.float32)
    pe = pe.at[:, 0::2].set(jnp.sin(pos * div))
    pe = pe.at[:, 1::2].set(jnp.cos(pos * div))
    return pe


def init_params(key, vocab, max_seq, d, n_layers, n_heads, d_ff):
    hd = d // n_heads
    keys = iter(jax.random.split(key, 8 + n_layers * 12))
    nrm_bf16 = lambda k, shape: (0.02 * jax.random.normal(k, shape)).astype(jnp.bfloat16)
    small_f32 = lambda k, shape: (0.01 * jax.random.normal(k, shape)).astype(jnp.float32)
    p = {
        "emb": (0.02 * jax.random.normal(next(keys), (vocab, d))).astype(jnp.float32),
        "pe": sinusoidal_positional_encoding(max_seq, d)[None],     # (1, max_seq, d)
        "ln0_g": jnp.ones((1, d), jnp.float32), "ln0_b": small_f32(next(keys), (1, d)),
        "lm_w": nrm_bf16(next(keys), (d, vocab)),
        "lm_b": small_f32(next(keys), (1, vocab)),
        "layers": [],
    }
    for _ in range(n_layers):
        layer = {
            "ln1_g": jnp.ones((1, d), jnp.float32), "ln1_b": small_f32(next(keys), (1, d)),
            "ln2_g": jnp.ones((1, d), jnp.float32), "ln2_b": small_f32(next(keys), (1, d)),
            # head-major QKV: (H, D, [q|k|v] per head), lane-aligned head slices
            "wqkv_h": nrm_bf16(next(keys), (n_heads, d, 3 * hd)),
            "bqkv_h": small_f32(next(keys), (n_heads, 1, 3 * hd)),
            # head-major out projection: (H, hd, D)
            "wo_h": nrm_bf16(next(keys), (n_heads, hd, d)),
            "bo": small_f32(next(keys), (1, d)),
            "w1": nrm_bf16(next(keys), (d, d_ff)), "b1": small_f32(next(keys), (1, d_ff)),
            "w2": nrm_bf16(next(keys), (d_ff, d)), "b2": small_f32(next(keys), (1, d)),
        }
        p["layers"].append(layer)
    return p


def language_model_forward(params, tokens, mask, n_heads):
    B, S = tokens.shape
    D = params["emb"].shape[1]
    # TODO(synk): token-embedding gather stays in plain JAX (data-dependent row gather; a
    # scalar-prefetch DMA-gather kernel is possible but not worth it at these sizes).
    emb = jnp.take(params["emb"], tokens, axis=0)                   # (B, S, D)
    pe = params["pe"][:, :S]                                        # (1, S, D)
    x = embed_pe_layernorm(emb, pe, params["ln0_g"], params["ln0_b"])   # bf16 residual stream
    # Additive key-padding bias, computed once and reused by every layer.
    mask_bias = ((mask.astype(jnp.float32) - 1.0) * jnp.float32(1e9)).reshape(B, 1, S)
    for lyr in params["layers"]:
        q, k, v = qkv_projection(x, lyr["ln1_g"], lyr["ln1_b"],
                                 lyr["wqkv_h"], lyr["bqkv_h"])
        x = flash_attention(q, k, v, mask_bias, lyr["wo_h"], lyr["bo"], x)
        x = ffn_block(x, lyr["ln2_g"], lyr["ln2_b"],
                      lyr["w1"], lyr["b1"], lyr["w2"], lyr["b2"])
    logits = lm_head(x.reshape(B * S, D), params["lm_w"], params["lm_b"])
    return logits.reshape(B, S, -1)


# ----------------------------- pure-JAX reference -----------------------------

def reference_forward(params, tokens, mask, n_heads):
    B, S = tokens.shape
    D = params["emb"].shape[1]
    hd = D // n_heads
    f32 = lambda a: a.astype(jnp.float32)

    def ln(x, g, b):
        m = x.mean(-1, keepdims=True)
        v = ((x - m) ** 2).mean(-1, keepdims=True)
        return (x - m) / jnp.sqrt(v + 1e-5) * g + b

    x = jnp.take(params["emb"], tokens, axis=0) + params["pe"][:, :S]
    x = ln(x, params["ln0_g"], params["ln0_b"])
    for lyr in params["layers"]:
        xn = ln(x, lyr["ln1_g"], lyr["ln1_b"])
        qkv = jnp.einsum("bsd,hde->bhse", xn, f32(lyr["wqkv_h"])) + f32(lyr["bqkv_h"])[None]
        q, k, v = qkv[..., :hd], qkv[..., hd:2 * hd], qkv[..., 2 * hd:]
        s = jnp.einsum("bhqe,bhke->bhqk", q, k) / math.sqrt(hd)
        s = jnp.where(mask[:, None, None, :] == 0, -1e9, s)
        p = jax.nn.softmax(s, axis=-1)
        ctx = jnp.einsum("bhqk,bhke->bhqe", p, v)
        attn = jnp.einsum("bhqe,hed->bqd", ctx, f32(lyr["wo_h"])) + f32(lyr["bo"])
        res = x + attn
        rn = ln(res, lyr["ln2_g"], lyr["ln2_b"])
        ff = jnp.maximum(rn @ f32(lyr["w1"]) + f32(lyr["b1"]), 0.0) @ f32(lyr["w2"]) + f32(lyr["b2"])
        x = res + ff
    return x @ f32(params["lm_w"]) + f32(params["lm_b"])


# ----------------------------- main -----------------------------

if __name__ == "__main__":
    VOCAB, MAX_SEQ, D, LAYERS, HEADS = 64, 16, 32, 2, 4
    D_FF = 4 * D
    B, S = 2, 8

    key = jax.random.PRNGKey(0)
    k_par, k_tok = jax.random.split(key)
    params = init_params(k_par, VOCAB, MAX_SEQ, D, LAYERS, HEADS, D_FF)

    tokens = jax.random.randint(k_tok, (B, S), 0, VOCAB, dtype=jnp.int32)
    mask = jnp.ones((B, S), jnp.float32).at[1, 6:].set(0.0)  # pad last 2 keys of sample 1

    logits = language_model_forward(params, tokens, mask, HEADS)
    jax.block_until_ready(logits)

    ref = reference_forward(params, tokens, mask, HEADS)
    assert logits.shape == (B, S, VOCAB)
    assert jnp.allclose(logits, ref, atol=1e-2, rtol=1e-2), "mismatch vs. pure-JAX reference"
    print("KERNEL_OK")
</pallas_src>

<mosaic_0001>
module attributes {stable_mosaic.version = 11 : i64} {
  func.func @_embed_ln_kernel(%arg0: i32, %arg1: i32, %arg2: memref<1x8x32xf32, #tpu.memory_space<vmem>>, %arg3: memref<1x8x32xf32, #tpu.memory_space<vmem>>, %arg4: memref<1x32xf32, #tpu.memory_space<vmem>>, %arg5: memref<1x32xf32, #tpu.memory_space<vmem>>, %arg6: memref<1x8x32xbf16, #tpu.memory_space<vmem>>) attributes {dimension_semantics = [#tpu.dimension_semantics<parallel>, #tpu.dimension_semantics<parallel>], iteration_bounds = array<i64: 2, 1>, scalar_prefetch = 0 : i64, scratch_operands = 0 : i64, tpu.core_type = #tpu.core_type<tc>, window_params = [{transform_indices = @transform_0, window_bounds = array<i64: 1, 8, 32>}, {transform_indices = @transform_1, window_bounds = array<i64: 1, 8, 32>}, {pipeline_mode = #tpu.pipeline_mode<synchronous>, transform_indices = @transform_2, window_bounds = array<i64: 1, 32>}, {pipeline_mode = #tpu.pipeline_mode<synchronous>, transform_indices = @transform_3, window_bounds = array<i64: 1, 32>}, {transform_indices = @transform_4, window_bounds = array<i64: 1, 8, 32>}]} {
    %c0 = arith.constant 0 : index
    %c0_0 = arith.constant 0 : index
    %c0_1 = arith.constant 0 : index
    %0 = vector.load %arg2[%c0, %c0_0, %c0_1] : memref<1x8x32xf32, #tpu.memory_space<vmem>>, vector<1x8x32xf32>
    %1 = vector.shape_cast %0 : vector<1x8x32xf32> to vector<8x32xf32>
    %c0_2 = arith.constant 0 : index
    %c0_3 = arith.constant 0 : index
    %c0_4 = arith.constant 0 : index
    %2 = vector.load %arg3[%c0_2, %c0_3, %c0_4] : memref<1x8x32xf32, #tpu.memory_space<vmem>>, vector<1x8x32xf32>
    %3 = vector.shape_cast %2 : vector<1x8x32xf32> to vector<8x32xf32>
    %4 = arith.addf %1, %3 : vector<8x32xf32>
    %cst = arith.constant dense<0.000000e+00> : vector<8xf32>
    %5 = vector.multi_reduction <add>, %4, %cst [1] : vector<8x32xf32> to vector<8xf32>
    %6 = vector.shape_cast %5 : vector<8xf32> to vector<8x1xf32>
    %cst_5 = arith.constant 3.200000e+01 : f32
    %7 = vector.broadcast %cst_5 : f32 to vector<8x1xf32>
    %8 = arith.divf %6, %7 : vector<8x1xf32>
    %9 = vector.broadcast %8 : vector<8x1xf32> to vector<8x32xf32>
    %10 = arith.subf %4, %9 : vector<8x32xf32>
    %11 = arith.mulf %10, %10 : vector<8x32xf32>
    %cst_6 = arith.constant dense<0.000000e+00> : vector<8xf32>
    %12 = vector.multi_reduction <add>, %11, %cst_6 [1] : vector<8x32xf32> to vector<8xf32>
    %13 = vector.shape_cast %12 : vector<8xf32> to vector<8x1xf32>
    %cst_7 = arith.constant 3.200000e+01 : f32
    %14 = vector.broadcast %cst_7 : f32 to vector<8x1xf32>
    %15 = arith.divf %13, %14 : vector<8x1xf32>
    %16 = vector.broadcast %8 : vector<8x1xf32> to vector<8x32xf32>
    %17 = arith.subf %4, %16 : vector<8x32xf32>
    %cst_8 = arith.constant 9.99999974E-6 : f32
    %18 = vector.broadcast %cst_8 : f32 to vector<8x1xf32>
    %19 = arith.addf %15, %18 : vector<8x1xf32>
    %20 = math.rsqrt %19 : vector<8x1xf32>
    %21 = vector.broadcast %20 : vector<8x1xf32> to vector<8x32xf32>
    %22 = arith.mulf %17, %21 : vector<8x32xf32>
    %c0_9 = arith.constant 0 : index
    %c0_10 = arith.constant 0 : index
    %23 = vector.load %arg4[%c0_9, %c0_10] : memref<1x32xf32, #tpu.memory_space<vmem>>, vector<1x32xf32>
    %24 = vector.broadcast %23 : vector<1x32xf32> to vector<8x32xf32>
    %25 = arith.mulf %22, %24 : vector<8x32xf32>
    %c0_11 = arith.constant 0 : index
    %c0_12 = arith.constant 0 : index
    %26 = vector.load %arg5[%c0_11, %c0_12] : memref<1x32xf32, #tpu.memory_space<vmem>>, vector<1x32xf32>
    %27 = vector.broadcast %26 : vector<1x32xf32> to vector<8x32xf32>
    %28 = arith.addf %25, %27 : vector<8x32xf32>
    %29 = vector.shape_cast %28 : vector<8x32xf32> to vector<1x8x32xf32>
    %30 = arith.truncf %29 : vector<1x8x32xf32> to vector<1x8x32xbf16>
    %c0_13 = arith.constant 0 : index
    %c0_14 = arith.constant 0 : index
    %c0_15 = arith.constant 0 : index
    %31 = vector.load %arg6[%c0_13, %c0_14, %c0_15] : memref<1x8x32xbf16, #tpu.memory_space<vmem>>, vector<1x8x32xbf16>
    tpu.vector_store %arg6[%c0_13, %c0_14, %c0_15], %30 {strides = array<i32>} : memref<1x8x32xbf16, #tpu.memory_space<vmem>>, vector<1x8x32xbf16>,
    return
  }
  func.func @transform_0(%arg0: i32, %arg1: i32) -> (i32, i32, i32) {
    %c0_i32 = arith.constant 0 : i32
    %c0_i32_0 = arith.constant 0 : i32
    return %arg0, %arg1, %c0_i32 : i32, i32, i32
  }
  func.func @transform_1(%arg0: i32, %arg1: i32) -> (i32, i32, i32) {
    %c0_i32 = arith.constant 0 : i32
    %c0_i32_0 = arith.constant 0 : i32
    %c0_i32_1 = arith.constant 0 : i32
    return %c0_i32, %arg1, %c0_i32_0 : i32, i32, i32
  }
  func.func @transform_2(%arg0: i32, %arg1: i32) -> (i32, i32) {
    %c0_i32 = arith.constant 0 : i32
    %c0_i32_0 = arith.constant 0 : i32
    %c0_i32_1 = arith.constant 0 : i32
    return %c0_i32, %c0_i32_0 : i32, i32
  }
  func.func @transform_3(%arg0: i32, %arg1: i32) -> (i32, i32) {
    %c0_i32 = arith.constant 0 : i32
    %c0_i32_0 = arith.constant 0 : i32
    %c0_i32_1 = arith.constant 0 : i32
    return %c0_i32, %c0_i32_0 : i32, i32
  }
  func.func @transform_4(%arg0: i32, %arg1: i32) -> (i32, i32, i32) {
    %c0_i32 = arith.constant 0 : i32
    %c0_i32_0 = arith.constant 0 : i32
    return %arg0, %arg1, %c0_i32 : i32, i32, i32
  }
}

</mosaic_0001>

<bundles_post_ra>
// kernel: tpu_custom_call.1
= control target key start
LH: loop header
LB: loop body
LE: loop exit
PB: predicated region body
PF: predicated region fallthrough
CT: control target
= control target key end

     0   :  { %9 = vsyncpa [#allocation3], 0  ;;  %s883_s0 = inlined_call_operand.hbm [shape: f32[2,8,32], index: 0, kind: input, shape index: {}]   ;;  %s884_s1 = inlined_call_operand.hbm [shape: f32[1,8,32], index: 1, kind: input, shape index: {}]   ;;  %s885_s2 = inlined_call_operand.vmem [shape: f32[1,32], index: 2, kind: input, shape index: {}]   ;;  %s886_s3 = inlined_call_operand.vmem [shape: f32[1,32], index: 3, kind: input, shape index: {}]   ;;  %s887_s4 = inlined_call_operand.hbm [shape: bf16[2,8,32], index: 4, kind: output, shape index: {}]  }
   0x1   :  { %11 = vsyncpa [#allocation3 + $0x1], 0 }
   0x2   :  { %12 = vsyncpa [#allocation6], 0 }
   0x3   :  { %13 = vsyncpa [#allocation4], 0 }
   0x4   :  { %15 = vsyncpa [#allocation4 + $0x1], 0  ;;  %s660_s15 = smov 0   ;;  %s662_s16 = smov 0  }
   0x5   :  { %s664_s17 = smov 0   ;;  %s666_s18 = smov 0  }
   0x6   :  { %s668_s19 = smov 0   ;;  %s670_s20 = smov 0  }
   0x7 LB: > { %s394_s21 = sadd.s32 4294967295, %s630_s20   ;;  %s395_s22 = sadd.s32 4294967294, %s630_s20   ;;  %s630_s20 = sphi %s670_s20, %s21_s20   ;;  %s626_s19 = sphi %s668_s19, %s912_s19   ;;  %s622_s18 = sphi %s666_s18, %s911_s18   ;;  %s618_s17 = sphi %s664_s17, %s910_s17   ;;  %s614_s16 = sphi %s662_s16, %s909_s16   ;;  %s610_s15 = sphi %s660_s15, %s908_s15  }
   0x8   : > { %p55_p0 = scmp.ne.s32.totalorder %s614_s16, %s610_s15  ;;  %p694_p1 = scmp.eq.s32.totalorder %s394_s21, 0 }
   0x9   : > { %p698_p2 = scmp.eq.s32.totalorder %s394_s21, 1  ;;  %p155_p3 = scmp.eq.s32.totalorder %s395_s22, 1 }
   0xa   : > { %s892_s23 = scalar_select %p694_p1, 1, 0 }
   0xb   : > { %s893_s24 = scalar_select %p698_p2, 1, 0 }
   0xc   : > { %p704_p4 = por %p694_p1, %p55_p0  ;;  %p396_p5 = scmp.ge.s32.totalorder %s630_s20, 1 }
   0xd   : > { %p709_p6 = por %p155_p3, %p55_p0  ;;  %p162_p7 = scmp.lt.s32.totalorder %s630_s20, 3 }
   0xe   : > { %s894_s25 = scalar_select %p704_p4, 1, 0 }
   0xf   : > { %s895_s26 = scalar_select %p709_p6, 1, 0 }
  0x10   : > { %p714_p8 = pnand %p396_p5, %p162_p7  ;;  %s632_s28 = smov [#allocation5]  }
  0x11   : > { %s177_s29 = sshll.u32 %s632_s28, 4  ;;  %s33_s5 = sadd.s32 1, %s626_s19  ;;  %s178_s29 = int_to_ptr.vmem [resolvable:$true] %s177_s29 }
  0x12   : > { %s896_s27 = scalar_select %p714_p8, 1, 0 }
  0x13   : > { %p419_p10 = pneg %p714_p8  ;;  %s42_s6 = sadd.s32 1, %s618_s17 }
  0x14   : > { %p729_p12 = scmp.ge.s32.totalorder %s33_s5, 2  ;;  %s486_s10 = scalar_lea.hbm %s884_s1, 128 }
  0x15   : > { %p723_p11 = pnand %p419_p10, %p694_p1  ;;  %p487_p13 = scmp.ne.s32.totalorder %s884_s1, %s486_s10 }
  0x16   : > { %s898_s7 = scalar_select %p729_p12, 1, 0 }
  0x17   : > { %p488_p0 = pneg %p723_p11  ;;  %p493_p7 = scmp.lt.u32.totalorder %s486_s10, %s884_s1 }
  0x19   : > { %p489_p3 = pnand %p488_p0, %p487_p13 }
  0x1b   : > { %p490_p5 = pneg %p489_p3 }
  0x1d   : > { %p495_p10 = pnand %p493_p7, %p490_p5 }
  0x1f   : > { %498 = shalt.err (!%p495_p10)
}
  0x20   : > { %s499_s21 = scalar_lea.vmem %s178_s29, 128  ;;  %p507_p4 = scmp.lt.s32.totalorder %s178_s29, %s178_s29 }
  0x21   : > { %p500_p9 = scmp.ne.s32.totalorder %s178_s29, %s499_s21  ;;  %p508_p8 = scmp.lt.s32.totalorder %s499_s21, %s499_s21 }
  0x23   : > { %p502_p6 = pnand %p500_p9, %p488_p0  ;;  %p509_p2 = por %p508_p8, %p507_p4 }
  0x25   : > { %p503_p1 = pneg %p502_p6 }
  0x27   : > { %p510_p12 = pnand %p509_p2, %p503_p1 }
  0x29   : > { %513 = shalt.err (!%p510_p12)
}
  0x2a   : > { %422 = dma.hbm_to_vmem [thread:$0]  (!%p723_p11), %s884_s1, 128, %s178_s29, [#allocation6]  }
  0x2b   : > { %p899_p4 = scmp.ne.s32.totalorder %s898_s7, 0  ;;  %p49_p1 = scmp.ne.s32.totalorder %s618_s17, %s614_s16 }
  0x2c   : > { %p50_p2 = scmp.eq.s32.totalorder %s630_s20, 0  ;;  %p432_p6 = scmp.lt.s32.totalorder %s630_s20, 2 }
  0x2d   : > { %s914_s5 = smov (%p899_p4, %s33_s5), 0  ;;  %p900_p12 = scmp.ne.s32.totalorder %s893_s24, 0 }
  0x2e   : > { %s37_s30 = ssub.s32 %s626_s19, %s914_s5  ;;  %p51_p9 = por %p50_p2, %p49_p1 }
  0x2f   : > { %p40_p8 = scmp.eq.s32.totalorder %s37_s30, 0  ;;  %p761_p13 = por %p900_p12, %p49_p1 }
  0x30   : > { %s194_s9 = sand.u32 1, %s618_s17   ;;  %s400_s7 = sshll.u32 %s626_s19, 7 }
  0x31   : > { %s769_s10 = scalar_select %p40_p8, %s618_s17, %s42_s6  }
  0x32   : > { %s399_s29 = sshll.u32 %s194_s9, 3  ;;  %s775_s13 = scalar_lea.hbm %s883_s0, %s400_s7 }
  0x33   : > { %s198_s24 = scalar_lea.vmem [#allocation2], %s399_s29  ;;  %p779_p11 = pnand %p432_p6, %p51_p9 }
  0x34   : > { %s206_s14 = sshll.u32 %s198_s24, 4  ;;  %s195_s6 = scalar_lea.sflag [#allocation3], %s194_s9  ;;  %s777_s14 = int_to_ptr.vmem [resolvable:$true] %s206_s14 }
  0x35   : > { %s514_s22 = scalar_lea.hbm %s775_s13, 128  ;;  %p516_p3 = pneg %p779_p11 }
  0x36   : > { %p515_p0 = scmp.ne.s32.totalorder %s775_s13, %s514_s22  ;;  %s519_s29 = scalar_lea.hbm %s883_s0, 256 }
  0x37   : > { %p520_p10 = scmp.lt.u32.totalorder %s775_s13, %s883_s0  ;;  %p521_p4 = scmp.lt.u32.totalorder %s519_s29, %s514_s22 }
  0x38   : > { %p517_p5 = pnand %p516_p3, %p515_p0  ;;  %p523_p2 = scmp.lt.u32.totalorder %s514_s22, %s775_s13 }
  0x39   : > { %p522_p1 = por %p521_p4, %p520_p10 }
  0x3a   : > { %p518_p7 = pneg %p517_p5 }
  0x3b   : > { %p524_p6 = por %p523_p2, %p522_p1 }
  0x3d   : > { %p525_p8 = pnand %p524_p6, %p518_p7 }
  0x3f   : > { %528 = shalt.err (!%p525_p8)
}
  0x40   : > { %s529_s9 = scalar_lea.vmem %s777_s14, 128  ;;  %s633_s12 = smov [#allocation2]  }
  0x41   : > { %p530_p9 = scmp.ne.s32.totalorder %s777_s14, %s529_s9  ;;  %s534_s24 = sshll.u32 %s633_s12, 4  ;;  %s535_s24 = int_to_ptr.vmem [resolvable:$false] %s534_s24 }
  0x42   : > { %s536_s28 = scalar_lea.vmem %s535_s24, 256  ;;  %p537_p5 = scmp.lt.s32.totalorder %s777_s14, %s535_s24 }
  0x43   : > { %p532_p12 = pnand %p530_p9, %p516_p3  ;;  %p538_p10 = scmp.lt.s32.totalorder %s536_s28, %s529_s9 }
  0x45   : > { %p533_p0 = pneg %p532_p12  ;;  %p539_p4 = por %p538_p10, %p537_p5 }
  0x47   : > { %p540_p1 = pnand %p539_p4, %p533_p0 }
  0x49   : > { %543 = shalt.err (!%p540_p1)
}
  0x4a   : > { %426 = dma.hbm_to_vmem [thread:$0]  (!%p779_p11), %s775_s13, 128, %s777_s14, %s195_s6  }
  0x4b   : > { %p903_p7 = scmp.ne.s32.totalorder %s896_s27, 0 }
  0x4c   : > { %s811_s22 = sand.u32 (!%p903_p7), 1, %s614_s16   ;;  %p904_p3 = scmp.ne.s32.totalorder (!%p903_p7), %s894_s25, 0 }
  0x4d   : > { %215 = sbr.rel (%p903_p7) target bundleno = 420 (0x1a4), region = 36  ;;  %s402_s30 = sshll.u32 (!%p903_p7), %s811_s22, 3 }
  0x4e   : > { %s218_s29 = scalar_lea.sflag (!%p903_p7), [#allocation3], %s811_s22  ;;  %s221_s7 = scalar_lea.vmem (!%p903_p7), [#allocation2], %s402_s30 }
  0x54   : > { %597 = dma.done.wait (%p904_p3), %s218_s29, 128  }
  0x55   : > { %599 = vsyncadd (%p904_p3), %s218_s29, 4294967168  ;;  %p905_p2 = scmp.ne.s32.totalorder %s892_s23, 0 }
  0x57   : > { %601 = dma.done.wait (%p905_p2), [#allocation6], 128  }
  0x58   : > { %603 = vsyncadd (%p905_p2), [#allocation6], 4294967168  ;;  %v250_v0 = vld [vmem:[%s221_s7] sm:$0xff]  ;;  %v251_v1 = vld [vmem:[#allocation5] sm:$0xff]  ;;  %vm253_vm0 = vcmask 261120   ;;  %s404_s23 = sshll.u32 %s811_s22, 2 }
  0x59   : > { %v252_v2 = vadd.f32 %v251_v1, %v250_v0  ;;  %v405_v13 = vld [vmem:[%s885_s2] ss:$0 sm:$0xff]  ;;  %s408_s21 = sshll.u32 %s622_s18, 6  ;;  %s249_s6 = scalar_lea.vmem [#allocation7], %s404_s23  ;;  %vm285_vm1 = vcmask 257024  }
  0x5a   : > { %v406_v15 = vld [vmem:[%s886_s3] ss:$0 sm:$0xff]  ;;  %s302_s11 = sshll.u32 %s249_s6, 4  ;;  %s834_s24 = scalar_lea.hbm %s887_s4, %s408_s21  ;;  %s836_s11 = int_to_ptr.vmem [resolvable:$true] %s302_s11 }
  0x5b   : > { %v254_v3 = vsel %vm253_vm0, %v252_v2, 0.0  ;;  %s288_s28 = scalar_lea.sflag [#allocation4], %s811_s22  ;;  %s544_s30 = scalar_lea.vmem %s836_s11, 64 }
  0x5c   : > { %255 = vadd.xlane.f32.xlu0 %v254_v3  ;;  %p545_p11 = scmp.ne.s32.totalorder %s836_s11, %s544_s30  ;;  %s634_s18 = smov [#allocation7]  }
  0x5d   : > { %s548_s29 = sshll.u32 %s634_s18, 4  ;;  %s549_s29 = int_to_ptr.vmem [resolvable:$false] %s548_s29 }
  0x5e   : > { %p546_p6 = pnand %p545_p11, %p761_p13  ;;  %s550_s7 = scalar_lea.vmem %s549_s29, 128 }
  0x5f   : > { %p551_p9 = scmp.lt.s32.totalorder %s836_s11, %s549_s29  ;;  %p552_p12 = scmp.lt.s32.totalorder %s550_s7, %s544_s30 }
  0x60   : > { %p547_p8 = pneg %p546_p6 }
  0x61   : > { %p553_p0 = por %p552_p12, %p551_p9 }
  0x63   : > { %p554_p5 = pnand %p553_p0, %p547_p8 }
  0xe9   : > { %v256_v4 = vpop.xlane.xlu0 %255 }
  0xea   : > { %v258_v5 = vmul.f32 0.03125, %v256_v4 }
  0xec   : > { %v259_v6 = vsub.f32 %v252_v2, %v258_v5 }
  0xee   : > { %v260_v7 = vmul.f32 %v259_v6, %v259_v6 }
  0xf0   : > { %v261_v8 = vsel %vm253_vm0, %v260_v7, 0.0 }
  0xf1   : > { %262 = vadd.xlane.f32.xlu0 %v261_v8 }
 0x17e   : > { %v263_v9 = vpop.xlane.xlu0 %262 }
 0x17f   : > { %v264_v10 = vmul.f32 0.03125, %v263_v9 }
 0x181   : > { %v265_v11 = vadd.f32 1e-05, %v264_v10 }
 0x183   : > { %484 = vrsqrt.f32 %v265_v11 }
 0x18d   : > { %v485_v12 = vpop.eup %484 }
 0x18e   : > { %v267_v14 = vmul.f32 %v485_v12, %v259_v6 }
 0x190   : > { %v275_v16 = vmul.f32 %v405_v13, %v267_v14 }
 0x192   : > { %v283_v17 = vadd.f32 %v406_v15, %v275_v16 }
 0x194   : > { %v284_v18 = vpack.c.bf16 %v283_v17, %v283_v17 }
 0x196   : > { %286 = vst.msk [vmem:[%s249_s6] sm:$0xf] %vm285_vm1, %v284_v18 }
 0x197   : > { %557 = shalt.err (!%p554_p5)
}
 0x198   : > { %s558_s22 = scalar_lea.hbm %s834_s24, 64  ;;  %s562_s27 = scalar_lea.hbm %s887_s4, 128 }
 0x199   : > { %p559_p10 = scmp.ne.s32.totalorder %s834_s24, %s558_s22  ;;  %p563_p7 = scmp.lt.u32.totalorder %s834_s24, %s887_s4 }
 0x19a   : > { %p564_p3 = scmp.lt.u32.totalorder %s562_s27, %s558_s22  ;;  %p566_p11 = scmp.lt.u32.totalorder %s558_s22, %s834_s24 }
 0x19b   : > { %p560_p4 = pnand %p559_p10, %p761_p13 }
 0x19c   : > { %p565_p2 = por %p564_p3, %p563_p7 }
 0x19d   : > { %p561_p1 = pneg %p560_p4 }
 0x19e   : > { %p567_p6 = por %p566_p11, %p565_p2 }
 0x1a0   : > { %p568_p8 = pnand %p567_p6, %p561_p1 }
 0x1a2   : > { %571 = shalt.err (!%p568_p8)
}
 0x1a3   : > { %417 = dma.vmem_to_hbm [thread:$0]  (%p761_p13), %s836_s11, 64, %s834_s24, %s288_s28  }
 0x1a4 PF: > { %s314_s21 = sand.u32 1, %s610_s15   ;;  %p906_p9 = scmp.ne.s32.totalorder %s895_s26, 0 }
 0x1a5   : > { %p907_p12 = scmp.ge.s32.totalorder %s630_s20, 2  ;;  %s315_s6 = scalar_lea.sflag [#allocation4], %s314_s21 }
 0x1a7   : > { %p428_p0 = pnand %p907_p12, %p906_p9 }
 0x1a9   : > { %605 = dma.done.wait (!%p428_p0), %s315_s6, 64  }
 0x1aa   : > { %607 = vsyncadd (!%p428_p0), %s315_s6, 4294967232  ;;  %s21_s20 = sadd.s32 1, %s630_s20   ;;  %s908_s15 = smov %s614_s16 }
 0x1ab   : > { %p18_p5 = scmp.ge.s32.totalorder %s21_s20, 4   ;;  %s909_s16 = smov %s618_s17 }
 0x1ac   : > { %s910_s17 = smov %s769_s10  ;;  %s911_s18 = smov %s626_s19 }
 0x1ad   : > { %s912_s19 = smov %s914_s5  ;;  %20 = sbr.rel (!%p18_p5) target bundleno = 7 (0x7), region = 86 }
 0x1b4   :  { %320 = vsyncpa [#allocation3], 1 }
 0x1b5   :  { %322 = vsyncpa [#allocation3 + $0x1], 1 }
 0x1b6   :  { %323 = vsyncpa [#allocation6], 1 }
 0x1b7   :  { %324 = vsyncpa [#allocation4], 1 }
 0x1b8   :  { %326 = vsyncpa [#allocation4 + $0x1], 1 }

</bundles_post_ra>
